<compile_context>
chip_gen: v6e
topology: v6e:2x2x1
jax: 0.10.0
libtpu: 0.0.40
codegen_flags: <defaults>
</compile_context>

<pallas_src>
import functools

import jax
import jax.numpy as jnp
from jax.experimental import pallas as pl
from jax.experimental.pallas import tpu as pltpu

_DMA_NBUF = 4  # outstanding row DMAs in the HBM-gather path (power of two)


# --------------------------------------------------------------------------- #
# Path 1: VMEM-resident one-hot MXU gather
# --------------------------------------------------------------------------- #
def _embedding_onehot_kernel(idx_ref, w_ref, o_ref, *, precision):
    """Gather TB embedding rows via a one-hot MXU matmul.

    idx_ref: (TB, 1) int32 token indices for this block.
    w_ref:   (V, E)  embedding table (VMEM resident, single pipeline buffer).
    o_ref:   (TB, E) output embeddings for this block.
    """
    idx = idx_ref[...]                                   # (TB, 1) int32
    table = w_ref[...]                                   # (V, E)
    tb = idx.shape[0]
    v = table.shape[0]
    col = jax.lax.broadcasted_iota(jnp.int32, (tb, v), 1)
    onehot = (col == idx).astype(table.dtype)            # (TB, V) exact 0/1
    acc = jnp.dot(onehot, table,
                  preferred_element_type=jnp.float32,
                  precision=precision)
    o_ref[...] = acc.astype(o_ref.dtype)


# --------------------------------------------------------------------------- #
# Path 2: HBM row-gather with pipelined per-row DMAs
# --------------------------------------------------------------------------- #
def _embedding_dma_gather_kernel(idx_ref, w_hbm, o_ref, sems):
    """Gather TB rows from the HBM table with up to _DMA_NBUF outstanding DMAs.

    idx_ref: (N_pad,) int32 indices, scalar-prefetched into SMEM.
    w_hbm:   (V, E) table left in HBM (memory_space=pl.ANY).
    o_ref:   (TB, E) output block in VMEM (DMA'd into directly).
    sems:    (_DMA_NBUF,) DMA semaphores.
    """
    tb = o_ref.shape[0]
    base = pl.program_id(0) * tb

    def _start(t):
        row = idx_ref[base + t]
        pltpu.make_async_copy(
            w_hbm.at[pl.ds(row, 1), :],
            o_ref.at[pl.ds(t, 1), :],
            sems.at[t & (_DMA_NBUF - 1)],
        ).start()

    def _wait(t):
        pltpu.make_async_copy(
            w_hbm.at[pl.ds(0, 1), :],
            o_ref.at[pl.ds(t, 1), :],
            sems.at[t & (_DMA_NBUF - 1)],
        ).wait()

    # Prime the pipeline.
    @pl.loop(0, min(_DMA_NBUF, tb))
    def _(t):
        _start(t)

    # Wait row t; keep _DMA_NBUF copies in flight.
    @pl.loop(0, tb)
    def _(t):
        _wait(t)

        @pl.when(t + _DMA_NBUF < tb)
        def _():
            _start(t + _DMA_NBUF)


# --------------------------------------------------------------------------- #
# Wrappers
# --------------------------------------------------------------------------- #
def _vmem_budget_bytes():
    """Generation-aware VMEM budget (75% of per-TensorCore capacity)."""
    try:
        cap = int(pltpu.get_tpu_info().vmem_capacity_bytes)
    except Exception:
        cap = 64 * 1024 * 1024  # conservative (v7x per-TC) fallback
    return int(0.75 * cap)


def _onehot_vmem_bytes(v, e_pad, tb, itemsize):
    table = v * e_pad * itemsize            # Buffered(1): a single table copy
    idx = 2 * tb * 128 * 4                  # (tb,1) int32 blocks pad to 128 lanes, 2 bufs
    out = 2 * tb * e_pad * itemsize         # double-buffered output blocks
    tmp = tb * v * 4 + tb * e_pad * 4       # one-hot + f32 accumulator temporaries
    return table + idx + out + tmp + (2 << 20)


def _lookup_onehot(idx, weight, v, e, e_pad, tb, n_blocks, n_pad, itemsize,
                   vmem_needed, budget):
    w = weight
    if e_pad != e:
        w = jnp.pad(w, ((0, 0), (0, e_pad - e)))   # lane-dense output (>=128)
    idx2d = idx.reshape(n_pad, 1)

    # f32 tables: force full-precision MXU passes so the gather is exact
    # (default precision would round rows to ~bf16).  bf16 tables are exact
    # with the default (1.0 * x accumulated in f32).
    precision = jax.lax.Precision.HIGHEST if w.dtype == jnp.float32 else None

    vmem_limit = int(min(max(vmem_needed, 16 * 1024 * 1024), budget))

    cost = pl.CostEstimate(
        flops=2 * n_pad * v * e_pad,
        transcendentals=0,
        bytes_accessed=int(v * e_pad * itemsize + n_pad * 4
                           + n_pad * e_pad * itemsize),
    )

    out = pl.pallas_call(
        functools.partial(_embedding_onehot_kernel, precision=precision),
        out_shape=jax.ShapeDtypeStruct((n_pad, e_pad), w.dtype),
        grid=(n_blocks,),
        in_specs=[
            pl.BlockSpec((tb, 1), lambda i: (i, 0)),          # token indices
            pl.BlockSpec((v, e_pad), lambda i: (0, 0),        # table: resident,
                         pipeline_mode=pl.Buffered(1)),       # single buffer
        ],
        out_specs=pl.BlockSpec((tb, e_pad), lambda i: (i, 0)),
        compiler_params=pltpu.CompilerParams(
            dimension_semantics=("parallel",),   # token blocks independent;
            vmem_limit_bytes=vmem_limit,         # v7x: each TC holds its own table copy
        ),
        cost_estimate=cost,
    )(idx2d, w)

    if e_pad != e:
        out = out[:, :e]
    return out


def _lookup_dma(idx, weight, e, tb, n_blocks, n_pad, itemsize):
    grid_spec = pltpu.PrefetchScalarGridSpec(
        num_scalar_prefetch=1,                      # indices -> SMEM
        grid=(n_blocks,),
        in_specs=[pl.BlockSpec(memory_space=pl.ANY)],   # table stays in HBM
        out_specs=pl.BlockSpec((tb, e), lambda i, idx_ref: (i, 0)),
        scratch_shapes=[pltpu.SemaphoreType.DMA((_DMA_NBUF,))],
    )
    cost = pl.CostEstimate(
        flops=0,
        transcendentals=0,
        bytes_accessed=int(n_pad * (4 + e * itemsize)),
    )
    return pl.pallas_call(
        _embedding_dma_gather_kernel,
        out_shape=jax.ShapeDtypeStruct((n_pad, e), weight.dtype),
        grid_spec=grid_spec,
        compiler_params=pltpu.CompilerParams(
            dimension_semantics=("parallel",),
        ),
        cost_estimate=cost,
    )(idx, weight)


def embedding_lookup(x, weight, *, token_block=256, max_onehot_vocab=2048,
                     force_path=None):
    """Pallas equivalent of torch.nn.functional.embedding(x, weight).

    x:      integer indices, any shape.
    weight: (num_embeddings, embed_dim) table.
    returns (*x.shape, embed_dim) with the dtype of `weight`.
    """
    v, e = weight.shape
    itemsize = jnp.dtype(weight.dtype).itemsize
    orig_shape = x.shape

    # Clip OOB / negative indices (torch raises; padded tail also gathers row 0).
    idx = jnp.clip(x.reshape(-1).astype(jnp.int32), 0, v - 1)
    n = idx.shape[0]

    # Token block: large enough to amortize the ~0.35us/step pipeline overhead,
    # but never larger than the (padded) token count.
    tb = int(min(token_block, max(8, pl.next_power_of_2(max(n, 1)))))
    n_blocks = pl.cdiv(n, tb)
    n_pad = n_blocks * tb
    if n_pad != n:
        idx = jnp.pad(idx, (0, n_pad - n))

    budget = _vmem_budget_bytes()
    e_pad = ((e + 127) // 128) * 128
    vmem_needed = _onehot_vmem_bytes(v, e_pad, tb, itemsize)

    if force_path is None:
        use_onehot = (v <= max_onehot_vocab) and (vmem_needed <= budget)
    else:
        use_onehot = force_path == "onehot"

    if use_onehot:
        out = _lookup_onehot(idx, weight, v, e, e_pad, tb, n_blocks, n_pad,
                             itemsize, vmem_needed, budget)
    else:
        out = _lookup_dma(idx, weight, e, tb, n_blocks, n_pad, itemsize)

    return out[:n].reshape(*orig_shape, e)


def sharded_embedding_forward(x, weight_shards, *, token_block=256):
    """ShardedEmbedding.forward.

    weight_shards: per-rank (num_embeddings, embed_dim // world_size) tables.
    """
    # reduce_on_backward(x, gang) is the identity in the forward pass.
    # gather(x, gang) (output all-gather) is simulated on a single device by
    # concatenating the weight shards along the embed dim and doing one fused
    # lookup — identical result, one kernel launch, lane-dense output.
    if len(weight_shards) == 1:
        full_w = weight_shards[0]
    else:
        full_w = jnp.concatenate(weight_shards, axis=1)
    return embedding_lookup(x, full_w, token_block=token_block)


def init_sharded_embedding(key, num_embeddings, embed_dim, world_size,
                           pad_idx=None, dtype=jnp.float32):
    """Mirrors StandardEmbedding.reset_parameters() + ShardedEmbedding._copy_weight()."""
    if embed_dim % world_size != 0:
        raise ValueError("embed_dim must be a multiple of world_size")
    full = jax.random.normal(key, (num_embeddings, embed_dim), dtype=dtype)
    if pad_idx is not None:
        full = full.at[pad_idx].set(0.0)
    shard = embed_dim // world_size
    shards = [full[:, r * shard:(r + 1) * shard] for r in range(world_size)]
    return full, shards


if __name__ == "__main__":
    key = jax.random.PRNGKey(0)
    k_w, k_x = jax.random.split(key)

    num_embeddings = 64
    embed_dim = 128
    world_size = 2          # simulated gang size
    pad_idx = 0
    batch, seq = 2, 8

    full_weight, weight_shards = init_sharded_embedding(
        k_w, num_embeddings, embed_dim, world_size, pad_idx)

    x = jax.random.randint(k_x, (batch, seq), 0, num_embeddings, dtype=jnp.int32)
    x = x.at[0, 0].set(pad_idx)   # make sure the pad row appears at least once

    # Reference in plain JAX: gather from the unsharded table.
    ref = jnp.take(full_weight, x, axis=0)

    # Path 1 (auto-selected: table fits VMEM): fused one-hot MXU gather.
    out = sharded_embedding_forward(x, weight_shards)
    out = jax.block_until_ready(out)
    assert out.shape == (batch, seq, embed_dim)
    # precision=HIGHEST makes the f32 gather (near-)exact; a wrong row or a
    # bf16-rounded row (~4e-3 rel) would fail this.
    assert jnp.allclose(out, ref, rtol=1e-5, atol=1e-5), "onehot gather mismatch"
    assert bool(jnp.all(out[0, 0] == 0.0)), "pad_idx row must be zero"

    # Path 2 (large-vocab HBM row-gather), forced at small shapes for validation.
    out_dma = embedding_lookup(x, full_weight, force_path="dma")
    out_dma = jax.block_until_ready(out_dma)
    assert bool(jnp.array_equal(out_dma, ref)), "dma gather mismatch"

    print("KERNEL_OK")
</pallas_src>

<mosaic_0001>
module attributes {stable_mosaic.version = 11 : i64} {
  func.func @_embedding_onehot_kernel(%arg0: i32, %arg1: memref<16x1xi32, #tpu.memory_space<vmem>>, %arg2: memref<64x128xf32, #tpu.memory_space<vmem>>, %arg3: memref<16x128xf32, #tpu.memory_space<vmem>>) attributes {dimension_semantics = [#tpu.dimension_semantics<parallel>], iteration_bounds = array<i64: 1>, scalar_prefetch = 0 : i64, scratch_operands = 0 : i64, tpu.core_type = #tpu.core_type<tc>, window_params = [{transform_indices = @transform_0, window_bounds = array<i64: 16, 1>}, {pipeline_mode = #tpu.pipeline_mode<synchronous>, transform_indices = @transform_1, window_bounds = array<i64: 64, 128>}, {transform_indices = @transform_2, window_bounds = array<i64: 16, 128>}]} {
    %c0 = arith.constant 0 : index
    %c0_0 = arith.constant 0 : index
    %0 = vector.load %arg1[%c0, %c0_0] : memref<16x1xi32, #tpu.memory_space<vmem>>, vector<16x1xi32>
    %c0_1 = arith.constant 0 : index
    %c0_2 = arith.constant 0 : index
    %1 = vector.load %arg2[%c0_1, %c0_2] : memref<64x128xf32, #tpu.memory_space<vmem>>, vector<64x128xf32>
    %2 = tpu.iota {dimensions = array<i32: 1>} : vector<16x64xi32>
    %3 = vector.broadcast %0 : vector<16x1xi32> to vector<16x64xi32>
    %4 = arith.cmpi eq, %2, %3 : vector<16x64xi32>
    %5 = arith.extui %4 : vector<16x64xi1> to vector<16x64xi32>
    %6 = arith.sitofp %5 : vector<16x64xi32> to vector<16x64xf32>
    %cst = arith.constant dense<0.000000e+00> : vector<16x128xf32>
    %7 = tpu.matmul %6, %1, %cst {dimension_numbers = #tpu.dot_dimension_numbers<[1], [0], [0], [1], [0, 0, 1, 1], [], []>, precision = #tpu.contract_precision<fp32>} : vector<16x64xf32>, vector<64x128xf32>, vector<16x128xf32> -> vector<16x128xf32>
    %c0_3 = arith.constant 0 : index
    %c0_4 = arith.constant 0 : index
    %8 = vector.load %arg3[%c0_3, %c0_4] : memref<16x128xf32, #tpu.memory_space<vmem>>, vector<16x128xf32>
    tpu.vector_store %arg3[%c0_3, %c0_4], %7 {strides = array<i32>} : memref<16x128xf32, #tpu.memory_space<vmem>>, vector<16x128xf32>,
    return
  }
  func.func @transform_0(%arg0: i32) -> (i32, i32) {
    %c0_i32 = arith.constant 0 : i32
    %c0_i32_0 = arith.constant 0 : i32
    return %arg0, %c0_i32 : i32, i32
  }
  func.func @transform_1(%arg0: i32) -> (i32, i32) {
    %c0_i32 = arith.constant 0 : i32
    %c0_i32_0 = arith.constant 0 : i32
    %c0_i32_1 = arith.constant 0 : i32
    return %c0_i32, %c0_i32_0 : i32, i32
  }
  func.func @transform_2(%arg0: i32) -> (i32, i32) {
    %c0_i32 = arith.constant 0 : i32
    %c0_i32_0 = arith.constant 0 : i32
    return %arg0, %c0_i32 : i32, i32
  }
}

</mosaic_0001>

<bundles_post_ra>
// kernel: tpu_custom_call.1
= control target key start
LH: loop header
LB: loop body
LE: loop exit
PB: predicated region body
PF: predicated region fallthrough
CT: control target
= control target key end

     0   :  { %7 = vsyncpa [#allocation3], 0  ;;  %s1108_s0 = inlined_call_operand.vmem [shape: s32[16,1], index: 0, kind: input, shape index: {}]   ;;  %s1109_s1 = inlined_call_operand.hbm [shape: f32[64,128], index: 1, kind: input, shape index: {}]   ;;  %s1110_s2 = inlined_call_operand.hbm [shape: f32[16,128], index: 2, kind: output, shape index: {}]  }
   0x1   :  { %8 = vsyncpa [#allocation4], 0  ;;  %s889_s9 = smov [#allocation2]  }
   0x2   :  { %s16_s10 = sshll.u32 %s889_s9, 4  ;;  %s17_s10 = int_to_ptr.vmem [resolvable:$true] %s16_s10 }
   0x3   :  { %s853_s11 = scalar_lea.vmem %s17_s10, 1024  ;;  %p858_p1 = scmp.lt.s32.totalorder %s17_s10, %s17_s10 }
   0x4   :  { %p854_p0 = scmp.ne.s32.totalorder %s17_s10, %s853_s11  ;;  %p859_p2 = scmp.lt.s32.totalorder %s853_s11, %s853_s11 }
   0x6   :  { %p860_p3 = por %p859_p2, %p858_p1 }
   0x8   :  { %p861_p4 = pnand %p860_p3, %p854_p0 }
   0xa   :  { %864 = shalt.err (!%p861_p4)
}
   0xb   :  { %s890_s12 = smov 128   ;;  %s891_s13 = smov 8  }
   0xc   :  { %22 = dma.hbm_to_vmem [thread:$0]  %s1109_s1, 1024, %s17_s10, [#allocation3], %s890_s12, %s890_s12, %s891_s13  }
   0xd   :  { %885 = dma.done.wait [#allocation3], 1024  }
   0xe   :  { %886 = vsyncadd [#allocation3], 4294966272  ;;  %v892_v0 = vmov 0   ;;  %v26_v1 = vld [vmem:[%s1108_s0] sm:$0xff]  ;;  %v27_v2 = vld [vmem:[%s1108_s0 + $0x8] sm:$0xff]  ;;  %v36_v51 = vlaneseq  ;;  %vm50_vm0 = vcmask 523264  }
   0xf   :  { %844 = vset.pattern.permute.xlu0 %v892_v0  ;;  %v35_v3 = vld [vmem:[#allocation2 + $0x38] sm:$0xff]  ;;  %v34_v5 = vld [vmem:[#allocation2 + $0x30] sm:$0xff]  ;;  %v33_v6 = vld [vmem:[#allocation2 + $0x28] sm:$0xff]  ;;  %v893_v54 = vmov 0.0   ;;  %s894_s0 = smov [#allocation5]  }
  0x10   :  { %39 = vperm.xlu0 %844, %v26_v1   ;;  %v922_v4 = vand.u32 4294901760, %v35_v3  ;;  %v32_v7 = vld [vmem:[#allocation2 + $0x20] sm:$0xff]  ;;  %v924_v8 = vand.u32 4294901760, %v34_v5  ;;  %v926_v9 = vand.u32 4294901760, %v33_v6  ;;  %v31_v11 = vld [vmem:[#allocation2 + $0x18] sm:$0xff]  ;;  %v30_v12 = vld [vmem:[#allocation2 + $0x10] sm:$0xff] }
  0x11   :  { %v928_v10 = vand.u32 4294901760, %v32_v7  ;;  %v29_v13 = vld [vmem:[#allocation2 + $0x8] sm:$0xff]  ;;  %v933_v15 = vand.u32 4294901760, %v31_v11  ;;  %v936_v16 = vand.u32 4294901760, %v30_v12  ;;  %v28_v18 = vld [vmem:[#allocation2] sm:$0xff]  ;;  %v37_v52 = vand.u32 127, %v36_v51 }
  0x12   :  { %v931_v14 = vsub.f32 %v35_v3, %v922_v4  ;;  %724 = vmatprep.subr.mxu0 %v922_v4  ;;  %v938_v17 = vand.u32 4294901760, %v29_v13  ;;  %v941_v19 = vsub.f32 %v34_v5, %v924_v8  ;;  %v944_v20 = vsub.f32 %v33_v6, %v926_v9  ;;  %s644_s1 = sshll.u32 %s894_s0, 4  ;;  %s645_s1 = int_to_ptr.vmem [resolvable:$true] %s644_s1 }
  0x13   :  { %v947_v21 = vsub.f32 %v32_v7, %v928_v10  ;;  %725 = vmatpush3.msra.mxu0 %v922_v4  ;;  %v954_v23 = vsub.f32 %v31_v11, %v933_v15  ;;  %v957_v24 = vsub.f32 %v30_v12, %v936_v16  ;;  %v960_v25 = vand.u32 4294901760, %v28_v18  ;;  %s865_s20 = scalar_lea.vmem %s645_s1, 256  ;;  %p870_p6 = scmp.lt.s32.totalorder %s645_s1, %s645_s1 }
  0x14   :  { %42 = vperm.xlu0 %844, %v27_v2   ;;  %v951_v22 = vand.u32 4294901760, %v931_v14  ;;  %726 = vmatprep.subr.mxu0 %v924_v8  ;;  %v963_v26 = vand.u32 4294901760, %v941_v19  ;;  %v966_v27 = vand.u32 4294901760, %v944_v20  ;;  %v978_v31 = vsub.f32 %v29_v13, %v938_v17  ;;  %p866_p5 = scmp.ne.s32.totalorder %s645_s1, %s865_s20  ;;  %p871_p7 = scmp.lt.s32.totalorder %s865_s20, %s865_s20 }
  0x15   :  { %v969_v28 = vand.u32 4294901760, %v947_v21  ;;  %727 = vmatpush3.msra.mxu0 %v924_v8  ;;  %v975_v30 = vand.u32 4294901760, %v954_v23  ;;  %v989_v36 = vand.u32 4294901760, %v957_v24  ;;  %v992_v37 = vsub.f32 %v28_v18, %v960_v25 }
  0x16   :  { %v170_v29 = vsub.f32 %v931_v14, %v951_v22  ;;  %728 = vmatprep.subr.mxu0 %v926_v9  ;;  %v177_v32 = vsub.f32 %v941_v19, %v963_v26  ;;  %v184_v33 = vsub.f32 %v944_v20, %v966_v27  ;;  %v999_v41 = vand.u32 4294901760, %v978_v31  ;;  %p872_p8 = por %p871_p7, %p870_p6 }
  0x17   :  { %729 = vmatpush3.msra.mxu0 %v926_v9  ;;  %v191_v35 = vsub.f32 %v947_v21, %v969_v28  ;;  %v198_v40 = vsub.f32 %v954_v23, %v975_v30  ;;  %v205_v43 = vsub.f32 %v957_v24, %v989_v36  ;;  %v1006_v44 = vand.u32 4294901760, %v992_v37 }
  0x18   :  { %v171_v34 = vand.u32 4294901760, %v170_v29  ;;  %730 = vmatprep.subr.mxu0 %v928_v10  ;;  %v178_v38 = vand.u32 4294901760, %v177_v32  ;;  %v185_v39 = vand.u32 4294901760, %v184_v33  ;;  %v212_v46 = vsub.f32 %v978_v31, %v999_v41  ;;  %p873_p9 = pnand %p872_p8, %p866_p5 }
  0x19   :  { %731 = vmatpush3.msra.mxu0 %v928_v10  ;;  %v192_v42 = vand.u32 4294901760, %v191_v35  ;;  %v199_v45 = vand.u32 4294901760, %v198_v40  ;;  %v206_v47 = vand.u32 4294901760, %v205_v43  ;;  %v219_v48 = vsub.f32 %v992_v37, %v1006_v44 }
  0x1a   :  { %743 = vmatprep.subr.mxu1 %v171_v34  ;;  %732 = vmatprep.subr.mxu0 %v933_v15  ;;  %v213_v49 = vand.u32 4294901760, %v212_v46 }
  0x1b   :  { %744 = vmatpush3.msra.mxu1 %v171_v34  ;;  %733 = vmatpush3.msra.mxu0 %v933_v15  ;;  %v220_v50 = vand.u32 4294901760, %v219_v48 }
  0x1c   :  { %745 = vmatprep.subr.mxu1 %v178_v38  ;;  %734 = vmatprep.subr.mxu0 %v936_v16 }
  0x1d   :  { %746 = vmatpush3.msra.mxu1 %v178_v38  ;;  %735 = vmatpush3.msra.mxu0 %v936_v16 }
  0x1e   :  { %747 = vmatprep.subr.mxu1 %v185_v39  ;;  %736 = vmatprep.subr.mxu0 %v938_v17 }
  0x1f   :  { %748 = vmatpush3.msra.mxu1 %v185_v39  ;;  %737 = vmatpush3.msra.mxu0 %v938_v17 }
  0x20   :  { %749 = vmatprep.subr.mxu1 %v192_v42  ;;  %738 = vmatprep.subr.mxu0 %v960_v25 }
  0x21   :  { %750 = vmatpush3.msra.mxu1 %v192_v42  ;;  %739 = vmatpush3.msra.mxu0 %v960_v25 }
  0x22   :  { %751 = vmatprep.subr.mxu1 %v199_v45  ;;  %762 = vmatprep.subr.mxu0 %v931_v14 }
  0x23   :  { %752 = vmatpush3.msra.mxu1 %v199_v45 }
  0x24   :  { %753 = vmatprep.subr.mxu1 %v206_v47 }
  0x25   :  { %754 = vmatpush3.msra.mxu1 %v206_v47 }
  0x26   :  { %755 = vmatprep.subr.mxu1 %v213_v49 }
  0x27   :  { %756 = vmatpush3.msra.mxu1 %v213_v49 }
  0x28   :  { %757 = vmatprep.subr.mxu1 %v220_v50 }
  0x29   :  { %758 = vmatpush3.msra.mxu1 %v220_v50 }
  0x2a   :  { %781 = vmatprep.subr.mxu1 %v922_v4 }
  0x8b   :  { %v40_v53 = vpop.permute.xlu0 %39 }
  0x8c   :  { %vm44_vm1 = vcmp.eq.s32.totalorder %v37_v52, %v40_v53 }
  0x8d   :  { %v1020_v55 = vsel %vm44_vm1, 1.0, %v893_v54 }
  0x8e   :  { %v52_v56 = vsel %vm50_vm0, %v1020_v55, 0  ;;  %759 = vmatprep.mubr.msk.f32.mxu1 %vm50_vm0, %v1020_v55 }
  0x8f   :  { %v131_v57 = vsub.f32 %v52_v56, %v52_v56  ;;  %v43_v58 = vpop.permute.xlu0 %42 }
  0x90   :  { %vm45_vm2 = vcmp.eq.s32.totalorder %v37_v52, %v43_v58 }
  0x91   :  { %v1026_v59 = vsel %vm45_vm2, 1.0, %v893_v54  ;;  %v132_v60 = vand.u32 4294901760, %v131_v57 }
  0x92   :  { %v55_v61 = vsel %vm50_vm0, %v1026_v59, 0  ;;  %760 = vmatmul.mubr.msk.f32.vlgmr.msra.gmra.mxu1 %vm50_vm0, %v1026_v59 }
  0x93   :  { %v141_v62 = vsub.f32 %v55_v61, %v55_v61  ;;  %782 = vmatpush3.msra.mxu1 %v922_v4  ;;  %797 = vmatprep.mubr.f32.mxu1 %v132_v60  ;;  %v133_v63 = vsub.f32 %v131_v57, %v132_v60 }
  0x94   :  { %783 = vmatprep.subr.mxu1 %v924_v8 }
  0x95   :  { %784 = vmatpush3.msra.mxu1 %v924_v8  ;;  %v134_v0 = vand.u32 4294901760, %v133_v63  ;;  %v142_v1 = vand.u32 4294901760, %v141_v62 }
  0x96   :  { %785 = vmatprep.subr.mxu1 %v926_v9 }
  0x97   :  { %786 = vmatpush3.msra.mxu1 %v926_v9  ;;  %740 = vmatprep.mubr.f32.mxu0 %v134_v0  ;;  %v143_v2 = vsub.f32 %v141_v62, %v142_v1 }
  0x98   :  { %787 = vmatprep.subr.mxu1 %v928_v10 }
  0x99   :  { %788 = vmatpush3.msra.mxu1 %v928_v10  ;;  %v144_v3 = vand.u32 4294901760, %v143_v2 }
  0x9a   :  { %789 = vmatprep.subr.mxu1 %v933_v15 }
  0x9b   :  { %790 = vmatpush3.msra.mxu1 %v933_v15  ;;  %741 = vmatmul.mubr.f32.vlgmr.msra.gmra.mxu0 %v144_v3 }
  0x9c   :  { %763 = vmatpush3.msra.mxu0 %v931_v14  ;;  %791 = vmatprep.subr.mxu1 %v936_v16 }
  0x9d   :  { %764 = vmatprep.subr.mxu0 %v941_v19  ;;  %778 = vmatprep.mubr.f32.mxu0 %v131_v57 }
  0x9e   :  { %792 = vmatpush3.msra.mxu1 %v936_v16  ;;  %765 = vmatpush3.msra.mxu0 %v941_v19 }
  0x9f   :  { %793 = vmatprep.subr.mxu1 %v938_v17  ;;  %766 = vmatprep.subr.mxu0 %v944_v20 }
  0xa0   :  { %794 = vmatpush3.msra.mxu1 %v938_v17  ;;  %767 = vmatpush3.msra.mxu0 %v944_v20 }
  0xa1   :  { %795 = vmatprep.subr.mxu1 %v960_v25  ;;  %768 = vmatprep.subr.mxu0 %v947_v21 }
  0xa2   :  { %796 = vmatpush3.msra.mxu1 %v960_v25  ;;  %769 = vmatpush3.msra.mxu0 %v947_v21 }
  0xa3   :  { %798 = vmatmul.mubr.f32.vlgmr.msra.gmra.mxu1 %v142_v1  ;;  %819 = vmatprep.subr.mxu1 %v922_v4 }
  0xa4   :  { %770 = vmatprep.subr.mxu0 %v954_v23  ;;  %820 = vmatpush3.msra.mxu1 %v922_v4 }
  0xa5   :  { %835 = vmatprep.mubr.msk.f32.mxu1 %vm50_vm0, %v1020_v55  ;;  %771 = vmatpush3.msra.mxu0 %v954_v23 }
  0xa6   :  { %821 = vmatprep.subr.mxu1 %v924_v8  ;;  %772 = vmatprep.subr.mxu0 %v957_v24 }
  0xa7   :  { %822 = vmatpush3.msra.mxu1 %v924_v8  ;;  %773 = vmatpush3.msra.mxu0 %v957_v24 }
  0xa8   :  { %823 = vmatprep.subr.mxu1 %v926_v9  ;;  %774 = vmatprep.subr.mxu0 %v978_v31 }
  0xa9   :  { %824 = vmatpush3.msra.mxu1 %v926_v9  ;;  %775 = vmatpush3.msra.mxu0 %v978_v31 }
  0xaa   :  { %825 = vmatprep.subr.mxu1 %v928_v10  ;;  %776 = vmatprep.subr.mxu0 %v992_v37 }
  0xab   :  { %826 = vmatpush3.msra.mxu1 %v928_v10  ;;  %777 = vmatpush3.msra.mxu0 %v992_v37 }
  0xac   :  { %827 = vmatprep.subr.mxu1 %v933_v15  ;;  %779 = vmatmul.mubr.f32.vlgmr.msra.gmra.mxu0 %v141_v62 }
  0xad   :  { %800 = vmatprep.subr.mxu0 %v951_v22  ;;  %828 = vmatpush3.msra.mxu1 %v933_v15 }
  0xae   :  { %801 = vmatpush3.msra.mxu0 %v951_v22  ;;  %816 = vmatprep.mubr.msk.f32.mxu0 %vm50_vm0, %v1020_v55 }
  0xaf   :  { %829 = vmatprep.subr.mxu1 %v936_v16  ;;  %802 = vmatprep.subr.mxu0 %v963_v26 }
  0xb0   :  { %830 = vmatpush3.msra.mxu1 %v936_v16  ;;  %803 = vmatpush3.msra.mxu0 %v963_v26 }
  0xb1   :  { %831 = vmatprep.subr.mxu1 %v938_v17  ;;  %804 = vmatprep.subr.mxu0 %v966_v27 }
  0xb2   :  { %832 = vmatpush3.msra.mxu1 %v938_v17  ;;  %805 = vmatpush3.msra.mxu0 %v966_v27 }
  0xb3   :  { %833 = vmatprep.subr.mxu1 %v960_v25  ;;  %806 = vmatprep.subr.mxu0 %v969_v28 }
  0xb4   :  { %834 = vmatpush3.msra.mxu1 %v960_v25  ;;  %807 = vmatpush3.msra.mxu0 %v969_v28 }
  0xb5   :  { %836 = vmatmul.mubr.msk.f32.vlgmr.msra.gmra.mxu1 %vm50_vm0, %v1026_v59  ;;  %808 = vmatprep.subr.mxu0 %v975_v30 }
  0xb6   :  { %809 = vmatpush3.msra.mxu0 %v975_v30 }
  0xb7   :  { %810 = vmatprep.subr.mxu0 %v989_v36 }
  0xb8   :  { %811 = vmatpush3.msra.mxu0 %v989_v36 }
  0xb9   :  { %812 = vmatprep.subr.mxu0 %v999_v41 }
  0xba   :  { %813 = vmatpush3.msra.mxu0 %v999_v41 }
  0xbb   :  { %814 = vmatprep.subr.mxu0 %v1006_v44 }
  0xbc   :  { %815 = vmatpush3.msra.mxu0 %v1006_v44 }
  0xbd   :  { %817 = vmatmul.mubr.msk.f32.vlgmr.msra.gmra.mxu0 %vm50_vm0, %v1026_v59 }
 0x152   :  { %v761_v5 = vpop.f32.mrf.mxu1 }
 0x154   :  { %v257_v8 = vpop.f32.mrf.mxu1 }
 0x15b   :  { %v742_v4 = vpop.f32.mrf.mxu0 }
 0x15c   :  { %v264_v9 = vadd.f32 %v761_v5, %v742_v4 }
 0x15d   :  { %v136_v6 = vpop.f32.mrf.mxu0 }
 0x15e   :  { %v258_v12 = vadd.f32 %v257_v8, %v136_v6 }
 0x163   :  { %v799_v10 = vpop.f32.mrf.mxu1 }
 0x165   :  { %v439_v15 = vpop.f32.mrf.mxu1 }
 0x16c   :  { %v780_v7 = vpop.f32.mrf.mxu0 }
 0x16d   :  { %v359_v13 = vadd.f32 %v780_v7, %v264_v9 }
 0x16e   :  { %v351_v11 = vpop.f32.mrf.mxu0 }
 0x16f   :  { %v352_v14 = vadd.f32 %v351_v11, %v258_v12  ;;  %v448_v16 = vadd.f32 %v799_v10, %v359_v13 }
 0x171   :  { %v440_v20 = vadd.f32 %v439_v15, %v352_v14 }
 0x175   :  { %v837_v17 = vpop.f32.mrf.mxu1 }
 0x177   :  { %v627_v24 = vpop.f32.mrf.mxu1 }
 0x17d   :  { %v818_v18 = vpop.f32.mrf.mxu0 }
 0x17e   :  { %v549_v19 = vadd.f32 %v818_v18, %v448_v16 }
 0x17f   :  { %v542_v21 = vpop.f32.mrf.mxu0 }
 0x180   :  { %v634_v22 = vadd.f32 %v837_v17, %v549_v19  ;;  %v543_v23 = vadd.f32 %v542_v21, %v440_v20 }
 0x182   :  { %638 = vst [vmem:[#allocation5 + $0x8] sm:$0xff] %v634_v22  ;;  %v628_v25 = vadd.f32 %v627_v24, %v543_v23 }
 0x184   :  { %637 = vst [vmem:[#allocation5] sm:$0xff] %v628_v25 }
 0x185   :  { %876 = shalt.err (!%p873_p9)
}
 0x186   :  { %650 = dma.vmem_to_hbm [thread:$0]  %s645_s1, 256, %s1110_s2, [#allocation4], %s890_s12, %s890_s12, %s891_s13  }
 0x187   :  { %887 = dma.done.wait [#allocation4], 256  }
 0x188   :  { %888 = vsyncadd [#allocation4], 4294967040 }
 0x189   :  { %654 = vsyncpa [#allocation3], 1 }
 0x18a   :  { %655 = vsyncpa [#allocation4], 1 }

</bundles_post_ra>
